<compile_context>
chip_gen: v5e
topology: v5e:2x2
jax: 0.10.0
libtpu: 0.0.40
codegen_flags: <defaults>
</compile_context>

<pallas_src>
import functools

import jax
import jax.numpy as jnp
from jax.experimental import pallas as pl
from jax.experimental.pallas import tpu as pltpu

SUBLANE = 8


def _round_up(n, m):
    return ((n + m - 1) // m) * m


def _cdiv(a, b):
    return -(-a // b)


def joint_classifier_kernel(x_ref, w1_ref, b1_ref, w2_ref, b2_ref, o_ref):
    # dense1: [TB, D_in] @ [D_in, H] -> f32
    h = jnp.dot(x_ref[...], w1_ref[...], preferred_element_type=jnp.float32)
    h = h + b1_ref[...]                       # b1 is [1, H], broadcasts over rows
    # LeakyReLU(negative_slope=0.2)
    h = jnp.where(h > 0, h, 0.2 * h)
    # dense3: [TB, H] @ [H, 4] -> f32
    out = jnp.dot(h, w2_ref[...], preferred_element_type=jnp.float32)
    o_ref[...] = (out + b2_ref[...]).astype(o_ref.dtype)


@functools.partial(jax.jit, static_argnames=("tb",))
def joint_classifier(x, w1, b1, w2, b2, *, tb=4096):
    """x: [B, D_in] f32; w1: [D_in, H]; b1: [H]/[1,H]; w2: [H, n_out]; b2: [n_out]/[1,n_out]."""
    B, D_in = x.shape
    H = w1.shape[1]
    n_out = w2.shape[1]

    b1 = b1.reshape(1, H).astype(jnp.float32)
    b2 = b2.reshape(1, n_out).astype(jnp.float32)
    x = x.astype(jnp.float32)
    w1 = w1.astype(jnp.float32)
    w2 = w2.astype(jnp.float32)

    # --- batch tile selection ------------------------------------------------
    B_ru = _round_up(B, SUBLANE)
    if B_ru <= tb:
        # Small batch: single tile covering everything (partial block is masked).
        tile_b = B_ru
    else:
        # Large batch: split (nearly) evenly into >=2 tiles so the "parallel"
        # batch axis shards across both TensorCores on v7x and tail padding
        # stays small.
        n_tiles = max(2, _cdiv(B_ru, tb))
        tile_b = _round_up(_cdiv(B_ru, n_tiles), SUBLANE)
    grid = (_cdiv(B, tile_b),)

    return pl.pallas_call(
        joint_classifier_kernel,
        out_shape=jax.ShapeDtypeStruct((B, n_out), jnp.float32),
        grid_spec=pltpu.PrefetchScalarGridSpec(
            num_scalar_prefetch=0,
            grid=grid,
            in_specs=[
                # x: streamed + double-buffered; last dim == full array dim (96)
                pl.BlockSpec((tile_b, D_in), lambda i: (i, 0)),
                # weights/biases: constant index_map -> VMEM-resident
                pl.BlockSpec((D_in, H), lambda i: (0, 0)),
                pl.BlockSpec((1, H), lambda i: (0, 0)),
                pl.BlockSpec((H, n_out), lambda i: (0, 0)),
                pl.BlockSpec((1, n_out), lambda i: (0, 0)),
            ],
            # Narrow (TB, 4) output block: writeback bytes shrink 32x vs the
            # padded lane-dense tile; partial last block is masked by Pallas.
            out_specs=pl.BlockSpec((tile_b, n_out), lambda i: (i, 0)),
        ),
        compiler_params=pltpu.CompilerParams(
            # Batch tiles are independent -> shard across both TCs on v7x,
            # neutral on single-TC v5e/v6e.
            dimension_semantics=("parallel",),
        ),
    )(x, w1, b1, w2, b2)


def init_params(key, input_dim=96, hidden_dim=256, n_classes=4):
    """Deterministic init mirroring weights_init_kaiming:
    Linear weights ~ kaiming_normal (fan_in, a=0) => std = sqrt(2 / fan_in);
    Linear biases keep PyTorch default: U(-1/sqrt(fan_in), 1/sqrt(fan_in))."""
    k1, k2, k3, k4 = jax.random.split(key, 4)
    std1 = (2.0 / input_dim) ** 0.5
    std2 = (2.0 / hidden_dim) ** 0.5
    # stored as [in, out] (transpose of PyTorch's [out, in])
    w1 = std1 * jax.random.normal(k1, (input_dim, hidden_dim), dtype=jnp.float32)
    w2 = std2 * jax.random.normal(k2, (hidden_dim, n_classes), dtype=jnp.float32)
    bound1 = 1.0 / (input_dim ** 0.5)
    bound2 = 1.0 / (hidden_dim ** 0.5)
    b1 = jax.random.uniform(k3, (1, hidden_dim), minval=-bound1, maxval=bound1,
                            dtype=jnp.float32)
    b2 = jax.random.uniform(k4, (1, n_classes), minval=-bound2, maxval=bound2,
                            dtype=jnp.float32)
    return w1, b1, w2, b2


def _reference(x, w1, b1, w2, b2):
    h = x @ w1 + b1
    h = jnp.where(h > 0, h, 0.2 * h)
    return h @ w2 + b2


if __name__ == "__main__":
    key = jax.random.PRNGKey(0)
    kx, kx2, kp = jax.random.split(key, 3)

    input_dim, hidden_dim, n_classes = 96, 256, 4
    w1, b1, w2, b2 = init_params(kp, input_dim, hidden_dim, n_classes)

    # Case 1: small batch, not a multiple of 8 (exercises single partial tile).
    B1 = 10
    x1 = jax.random.normal(kx, (B1, input_dim), dtype=jnp.float32)
    out1 = jax.block_until_ready(joint_classifier(x1, w1, b1, w2, b2))
    ref1 = _reference(x1, w1, b1, w2, b2)
    assert out1.shape == (B1, n_classes)
    assert jnp.allclose(out1, ref1, atol=2e-2, rtol=2e-2), (
        float(jnp.max(jnp.abs(out1 - ref1))))

    # Case 2: multi-tile grid with a partial last tile (small tb to keep it cheap).
    B2 = 601
    x2 = jax.random.normal(kx2, (B2, input_dim), dtype=jnp.float32)
    out2 = jax.block_until_ready(joint_classifier(x2, w1, b1, w2, b2, tb=256))
    ref2 = _reference(x2, w1, b1, w2, b2)
    assert out2.shape == (B2, n_classes)
    assert jnp.allclose(out2, ref2, atol=2e-2, rtol=2e-2), (
        float(jnp.max(jnp.abs(out2 - ref2))))

    print("KERNEL_OK")
</pallas_src>

<mosaic_0001>
module attributes {stable_mosaic.version = 11 : i64} {
  func.func @joint_classifier_kernel(%arg0: i32, %arg1: memref<16x96xf32, #tpu.memory_space<vmem>>, %arg2: memref<96x256xf32, #tpu.memory_space<vmem>>, %arg3: memref<1x256xf32, #tpu.memory_space<vmem>>, %arg4: memref<256x4xf32, #tpu.memory_space<vmem>>, %arg5: memref<1x4xf32, #tpu.memory_space<vmem>>, %arg6: memref<16x4xf32, #tpu.memory_space<vmem>>) attributes {dimension_semantics = [#tpu.dimension_semantics<parallel>], iteration_bounds = array<i64: 1>, scalar_prefetch = 0 : i64, scratch_operands = 0 : i64, tpu.core_type = #tpu.core_type<tc>, window_params = [{transform_indices = @transform_0, window_bounds = array<i64: 16, 96>}, {pipeline_mode = #tpu.pipeline_mode<synchronous>, transform_indices = @transform_1, window_bounds = array<i64: 96, 256>}, {pipeline_mode = #tpu.pipeline_mode<synchronous>, transform_indices = @transform_2, window_bounds = array<i64: 1, 256>}, {pipeline_mode = #tpu.pipeline_mode<synchronous>, transform_indices = @transform_3, window_bounds = array<i64: 256, 4>}, {pipeline_mode = #tpu.pipeline_mode<synchronous>, transform_indices = @transform_4, window_bounds = array<i64: 1, 4>}, {transform_indices = @transform_5, window_bounds = array<i64: 16, 4>}]} {
    %c0 = arith.constant 0 : index
    %c0_0 = arith.constant 0 : index
    %0 = vector.load %arg1[%c0, %c0_0] : memref<16x96xf32, #tpu.memory_space<vmem>>, vector<16x96xf32>
    %c0_1 = arith.constant 0 : index
    %c0_2 = arith.constant 0 : index
    %1 = vector.load %arg2[%c0_1, %c0_2] : memref<96x256xf32, #tpu.memory_space<vmem>>, vector<96x256xf32>
    %cst = arith.constant dense<0.000000e+00> : vector<16x256xf32>
    %2 = tpu.matmul %0, %1, %cst {dimension_numbers = #tpu.dot_dimension_numbers<[1], [0], [0], [1], [0, 0, 1, 1], [], []>} : vector<16x96xf32>, vector<96x256xf32>, vector<16x256xf32> -> vector<16x256xf32>
    %c0_3 = arith.constant 0 : index
    %c0_4 = arith.constant 0 : index
    %3 = vector.load %arg3[%c0_3, %c0_4] : memref<1x256xf32, #tpu.memory_space<vmem>>, vector<1x256xf32>
    %4 = vector.broadcast %3 : vector<1x256xf32> to vector<16x256xf32>
    %5 = arith.addf %2, %4 : vector<16x256xf32>
    %cst_5 = arith.constant 0.000000e+00 : f32
    %6 = vector.broadcast %cst_5 : f32 to vector<16x256xf32>
    %7 = arith.cmpf ogt, %5, %6 : vector<16x256xf32>
    %cst_6 = arith.constant 2.000000e-01 : f32
    %8 = vector.broadcast %cst_6 : f32 to vector<16x256xf32>
    %9 = arith.mulf %8, %5 : vector<16x256xf32>
    %10 = arith.select %7, %5, %9 : vector<16x256xi1>, vector<16x256xf32>
    %c0_7 = arith.constant 0 : index
    %c0_8 = arith.constant 0 : index
    %11 = vector.load %arg4[%c0_7, %c0_8] : memref<256x4xf32, #tpu.memory_space<vmem>>, vector<256x4xf32>
    %cst_9 = arith.constant dense<0.000000e+00> : vector<16x4xf32>
    %12 = tpu.matmul %10, %11, %cst_9 {dimension_numbers = #tpu.dot_dimension_numbers<[1], [0], [0], [1], [0, 0, 1, 1], [], []>} : vector<16x256xf32>, vector<256x4xf32>, vector<16x4xf32> -> vector<16x4xf32>
    %c0_10 = arith.constant 0 : index
    %c0_11 = arith.constant 0 : index
    %13 = vector.load %arg5[%c0_10, %c0_11] : memref<1x4xf32, #tpu.memory_space<vmem>>, vector<1x4xf32>
    %14 = vector.broadcast %13 : vector<1x4xf32> to vector<16x4xf32>
    %15 = arith.addf %12, %14 : vector<16x4xf32>
    %c0_12 = arith.constant 0 : index
    %c0_13 = arith.constant 0 : index
    %16 = vector.load %arg6[%c0_12, %c0_13] : memref<16x4xf32, #tpu.memory_space<vmem>>, vector<16x4xf32>
    tpu.vector_store %arg6[%c0_12, %c0_13], %15 {strides = array<i32>} : memref<16x4xf32, #tpu.memory_space<vmem>>, vector<16x4xf32>,
    return
  }
  func.func @transform_0(%arg0: i32) -> (i32, i32) {
    %c0_i32 = arith.constant 0 : i32
    %c0_i32_0 = arith.constant 0 : i32
    return %arg0, %c0_i32 : i32, i32
  }
  func.func @transform_1(%arg0: i32) -> (i32, i32) {
    %c0_i32 = arith.constant 0 : i32
    %c0_i32_0 = arith.constant 0 : i32
    %c0_i32_1 = arith.constant 0 : i32
    return %c0_i32, %c0_i32_0 : i32, i32
  }
  func.func @transform_2(%arg0: i32) -> (i32, i32) {
    %c0_i32 = arith.constant 0 : i32
    %c0_i32_0 = arith.constant 0 : i32
    %c0_i32_1 = arith.constant 0 : i32
    return %c0_i32, %c0_i32_0 : i32, i32
  }
  func.func @transform_3(%arg0: i32) -> (i32, i32) {
    %c0_i32 = arith.constant 0 : i32
    %c0_i32_0 = arith.constant 0 : i32
    %c0_i32_1 = arith.constant 0 : i32
    return %c0_i32, %c0_i32_0 : i32, i32
  }
  func.func @transform_4(%arg0: i32) -> (i32, i32) {
    %c0_i32 = arith.constant 0 : i32
    %c0_i32_0 = arith.constant 0 : i32
    %c0_i32_1 = arith.constant 0 : i32
    return %c0_i32, %c0_i32_0 : i32, i32
  }
  func.func @transform_5(%arg0: i32) -> (i32, i32) {
    %c0_i32 = arith.constant 0 : i32
    %c0_i32_0 = arith.constant 0 : i32
    return %arg0, %c0_i32 : i32, i32
  }
}

</mosaic_0001>

<bundles_post_ra>
// kernel: joint_classifier.1
= control target key start
LH: loop header
LB: loop body
LE: loop exit
PB: predicated region body
PF: predicated region fallthrough
CT: control target
= control target key end

     0   :  { %vm52_vm0 = vcmask 785408   ;;  %vm199_vm5 = vcmask 31744   ;;  %s431_s1 = inlined_call_operand.vmem [shape: f32[96,256], index: 1, kind: input, shape index: {}]   ;;  %s432_s3 = inlined_call_operand.vmem [shape: f32[256,4], index: 3, kind: input, shape index: {}]   ;;  %s433_s0 = inlined_call_operand.vmem [shape: f32[10,96], index: 0, kind: input, shape index: {}]   ;;  %s434_s4 = inlined_call_operand.vmem [shape: f32[1,4], index: 4, kind: input, shape index: {}]   ;;  %s435_s2 = inlined_call_operand.vmem [shape: f32[1,256], index: 2, kind: input, shape index: {}]   ;;  %s436_s5 = inlined_call_operand.vmem [shape: f32[10,4], index: 5, kind: output, shape index: {}]  }
   0x1   :  { %v44_v0 = vld [vmem:[%s431_s1 + $0xb0] sm:$0xff]  ;;  %v45_v1 = vld [vmem:[%s431_s1 + $0xb8] sm:$0xff]  ;;  %v42_v2 = vld [vmem:[%s431_s1 + $0xa0] sm:$0xff] }
   0x2   :  { %63 = vmatpush.msra.mxu0 %v44_v0  ;;  %86 = vmatpush.msra.mxu1 %v45_v1  ;;  %v43_v3 = vld [vmem:[%s431_s1 + $0xa8] sm:$0xff]  ;;  %v40_v4 = vld [vmem:[%s431_s1 + $0x90] sm:$0xff]  ;;  %v41_v5 = vld [vmem:[%s431_s1 + $0x98] sm:$0xff] }
   0x3   :  { %v38_v6 = vld [vmem:[%s431_s1 + $0x80] sm:$0xff]  ;;  %v39_v7 = vld [vmem:[%s431_s1 + $0x88] sm:$0xff]  ;;  %v36_v8 = vld [vmem:[%s431_s1 + $0x70] sm:$0xff] }
   0x4   :  { %64 = vmatpush.msra.mxu0 %v42_v2  ;;  %87 = vmatpush.msra.mxu1 %v43_v3  ;;  %v37_v9 = vld [vmem:[%s431_s1 + $0x78] sm:$0xff]  ;;  %v34_v10 = vld [vmem:[%s431_s1 + $0x60] sm:$0xff]  ;;  %v35_v11 = vld [vmem:[%s431_s1 + $0x68] sm:$0xff] }
   0x5   :  { %v132_v12 = vld [vmem:[%s432_s3 + $0x78] sm:$0xff]  ;;  %v131_v14 = vld [vmem:[%s432_s3 + $0x70] sm:$0xff]  ;;  %v130_v18 = vld [vmem:[%s432_s3 + $0x68] sm:$0xff] }
   0x6   :  { %65 = vmatpush.msra.mxu0 %v40_v4  ;;  %88 = vmatpush.msra.mxu1 %v41_v5  ;;  %v148_v13 = vld [vmem:[%s432_s3 + $0xf8] sm:$0xff]  ;;  %v147_v15 = vld [vmem:[%s432_s3 + $0xf0] sm:$0xff]  ;;  %v146_v19 = vld [vmem:[%s432_s3 + $0xe8] sm:$0xff] }
   0x7   :  { %v32_v16 = vld [vmem:[%s431_s1 + $0x50] sm:$0xff]  ;;  %v33_v17 = vld [vmem:[%s431_s1 + $0x58] sm:$0xff]  ;;  %153 = vmatpush.msra.mxu2 %v132_v12  ;;  %176 = vmatpush.msra.mxu3 %v148_v13  ;;  %v30_v20 = vld [vmem:[%s431_s1 + $0x40] sm:$0xff] }
   0x8   :  { %66 = vmatpush.msra.mxu0 %v38_v6  ;;  %89 = vmatpush.msra.mxu1 %v39_v7  ;;  %v31_v21 = vld [vmem:[%s431_s1 + $0x48] sm:$0xff]  ;;  %v129_v22 = vld [vmem:[%s432_s3 + $0x60] sm:$0xff]  ;;  %v28_v24 = vld [vmem:[%s431_s1 + $0x30] sm:$0xff] }
   0x9   :  { %154 = vmatpush.msra.mxu2 %v131_v14  ;;  %177 = vmatpush.msra.mxu3 %v147_v15  ;;  %v145_v23 = vld [vmem:[%s432_s3 + $0xe0] sm:$0xff]  ;;  %v29_v25 = vld [vmem:[%s431_s1 + $0x38] sm:$0xff]  ;;  %v27_v29 = vld [vmem:[%s431_s1 + $0x28] sm:$0xff] }
   0xa   :  { %67 = vmatpush.msra.mxu0 %v36_v8  ;;  %90 = vmatpush.msra.mxu1 %v37_v9  ;;  %v128_v26 = vld [vmem:[%s432_s3 + $0x58] sm:$0xff]  ;;  %v26_v28 = vld [vmem:[%s431_s1 + $0x20] sm:$0xff]  ;;  %v127_v30 = vld [vmem:[%s432_s3 + $0x50] sm:$0xff] }
   0xb   :  { %155 = vmatpush.msra.mxu2 %v130_v18  ;;  %178 = vmatpush.msra.mxu3 %v146_v19  ;;  %v144_v27 = vld [vmem:[%s432_s3 + $0xd8] sm:$0xff]  ;;  %v143_v31 = vld [vmem:[%s432_s3 + $0xd0] sm:$0xff]  ;;  %v126_v34 = vld [vmem:[%s432_s3 + $0x48] sm:$0xff] }
   0xc   :  { %68 = vmatpush.msra.mxu0 %v34_v10  ;;  %91 = vmatpush.msra.mxu1 %v35_v11  ;;  %v24_v32 = vld [vmem:[%s431_s1 + $0x10] sm:$0xff]  ;;  %v25_v33 = vld [vmem:[%s431_s1 + $0x18] sm:$0xff]  ;;  %v142_v35 = vld [vmem:[%s432_s3 + $0xc8] sm:$0xff] }
   0xd   :  { %156 = vmatpush.msra.mxu2 %v129_v22  ;;  %179 = vmatpush.msra.mxu3 %v145_v23  ;;  %v22_v36 = vld [vmem:[%s431_s1] sm:$0xff]  ;;  %v23_v37 = vld [vmem:[%s431_s1 + $0x8] sm:$0xff]  ;;  %v124_v41 = vld [vmem:[%s432_s3 + $0x38] sm:$0xff] }
   0xe   :  { %69 = vmatpush.msra.mxu0 %v32_v16  ;;  %92 = vmatpush.msra.mxu1 %v33_v17  ;;  %v20_v38 = vld [vmem:[%s433_s0] sm:$0xff]  ;;  %v140_v42 = vld [vmem:[%s432_s3 + $0xb8] sm:$0xff]  ;;  %v123_v43 = vld [vmem:[%s432_s3 + $0x30] sm:$0xff] }
   0xf   :  { %157 = vmatpush.msra.mxu2 %v128_v26  ;;  %180 = vmatpush.msra.mxu3 %v144_v27  ;;  %v125_v39 = vld [vmem:[%s432_s3 + $0x40] sm:$0xff]  ;;  %v139_v44 = vld [vmem:[%s432_s3 + $0xb0] sm:$0xff]  ;;  %v122_v45 = vld [vmem:[%s432_s3 + $0x28] sm:$0xff] }
  0x10   :  { %70 = vmatpush.msra.mxu0 %v30_v20  ;;  %93 = vmatpush.msra.mxu1 %v31_v21  ;;  %v141_v40 = vld [vmem:[%s432_s3 + $0xc0] sm:$0xff]  ;;  %v138_v46 = vld [vmem:[%s432_s3 + $0xa8] sm:$0xff]  ;;  %v120_v50 = vld [vmem:[%s432_s3 + $0x18] sm:$0xff] }
  0x11   :  { %158 = vmatpush.msra.mxu2 %v127_v30  ;;  %181 = vmatpush.msra.mxu3 %v143_v31  ;;  %v21_v47 = vld [vmem:[%s433_s0 + $0x8] sm:$0xff]  ;;  %v121_v48 = vld [vmem:[%s432_s3 + $0x20] sm:$0xff]  ;;  %v136_v51 = vld [vmem:[%s432_s3 + $0x98] sm:$0xff] }
  0x12   :  { %71 = vmatpush.msra.mxu0 %v28_v24  ;;  %94 = vmatpush.msra.mxu1 %v29_v25  ;;  %v137_v49 = vld [vmem:[%s432_s3 + $0xa0] sm:$0xff]  ;;  %v119_v52 = vld [vmem:[%s432_s3 + $0x10] sm:$0xff]  ;;  %v118_v54 = vld [vmem:[%s432_s3 + $0x8] sm:$0xff] }
  0x13   :  { %159 = vmatpush.msra.mxu2 %v126_v34  ;;  %182 = vmatpush.msra.mxu3 %v142_v35  ;;  %v135_v53 = vld [vmem:[%s432_s3 + $0x90] sm:$0xff]  ;;  %v134_v55 = vld [vmem:[%s432_s3 + $0x88] sm:$0xff]  ;;  %v117_v56 = vld [vmem:[%s432_s3] sm:$0xff] }
  0x14   :  { %72 = vmatpush.msra.mxu0 %v26_v28  ;;  %95 = vmatpush.msra.mxu1 %v27_v29  ;;  %v133_v57 = vld [vmem:[%s432_s3 + $0x80] sm:$0xff] }
  0x15   :  { %160 = vmatpush.msra.mxu2 %v125_v39  ;;  %183 = vmatpush.msra.mxu3 %v141_v40  ;;  %v46_v58 = vld [vmem:[%s435_s2] sm:$0x3] }
  0x16   :  { %73 = vmatpush.msra.mxu0 %v24_v32  ;;  %96 = vmatpush.msra.mxu1 %v25_v33  ;;  %v48_v59 = vperm.slane %v46_v58, 0  ;;  %v49_v60 = vperm.slane %v46_v58, 1  ;;  %v210_v13 = vld [vmem:[%s434_s4] ss:$0 sm:$0xff] }
  0x17   :  { %161 = vmatpush.msra.mxu2 %v124_v41  ;;  %184 = vmatpush.msra.mxu3 %v140_v42 }
  0x18   :  { %74 = vmatpush.msra.mxu0 %v22_v36  ;;  %97 = vmatpush.msra.mxu1 %v23_v37 }
  0x19   :  { %206 = vmatmul.msk.f32.vlgmr.msra.gmra.mxu0 %vm52_vm0, %v20_v38  ;;  %208 = vmatmul.msk.f32.vlgmr.msra.gmra.mxu1 %vm52_vm0, %v20_v38 }
  0x1a   :  { %162 = vmatpush.msra.mxu2 %v123_v43  ;;  %185 = vmatpush.msra.mxu3 %v139_v44 }
  0x1c   :  { %163 = vmatpush.msra.mxu2 %v122_v45  ;;  %186 = vmatpush.msra.mxu3 %v138_v46 }
  0x1e   :  { %164 = vmatpush.msra.mxu2 %v121_v48  ;;  %187 = vmatpush.msra.mxu3 %v137_v49 }
  0x20   :  { %165 = vmatpush.msra.mxu2 %v120_v50  ;;  %188 = vmatpush.msra.mxu3 %v136_v51 }
  0x21   :  { %207 = vmatmul.msk.f32.gmra.mxu0 %vm52_vm0, %v21_v47  ;;  %209 = vmatmul.msk.f32.gmra.mxu1 %vm52_vm0, %v21_v47 }
  0x22   :  { %166 = vmatpush.msra.mxu2 %v119_v52  ;;  %189 = vmatpush.msra.mxu3 %v135_v53 }
  0x24   :  { %167 = vmatpush.msra.mxu2 %v118_v54  ;;  %190 = vmatpush.msra.mxu3 %v134_v55 }
  0x26   :  { %168 = vmatpush.msra.mxu2 %v117_v56  ;;  %191 = vmatpush.msra.mxu3 %v133_v57 }
  0x96   :  { %v76_v61 = vpop.f32.mrf.mxu0  ;;  %v99_v62 = vpop.f32.mrf.mxu1 }
  0x97   :  { %v77_v63 = vadd.f32 %v76_v61, %v48_v59  ;;  %v100_v0 = vadd.f32 %v99_v62, %v49_v60 }
  0x99   :  { %vm105_vm1 = vcmp.gt.f32.partialorder %v77_v63, 0.0  ;;  %v109_v1 = vmul.f32 0.2, %v77_v63  ;;  %vm106_vm2 = vcmp.gt.f32.partialorder %v100_v0, 0.0  ;;  %v110_v2 = vmul.f32 0.2, %v100_v0 }
  0x9b   :  { %v113_v3 = vsel %vm105_vm1, %v77_v63, %v109_v1  ;;  %v114_v4 = vsel %vm106_vm2, %v100_v0, %v110_v2 }
  0x9c   :  { %169 = vmatmul.f32.vlgmr.msra.gmra.mxu2 %v113_v3  ;;  %192 = vmatmul.f32.vlgmr.msra.gmra.mxu3 %v114_v4 }
  0x9e   :  { %v79_v5 = vpop.f32.mrf.mxu0  ;;  %v102_v6 = vpop.f32.mrf.mxu1 }
  0x9f   :  { %v80_v7 = vadd.f32 %v79_v5, %v48_v59  ;;  %v103_v8 = vadd.f32 %v102_v6, %v49_v60 }
  0xa1   :  { %vm107_vm3 = vcmp.gt.f32.partialorder %v80_v7, 0.0  ;;  %v111_v9 = vmul.f32 0.2, %v80_v7  ;;  %vm108_vm4 = vcmp.gt.f32.partialorder %v103_v8, 0.0  ;;  %v112_v10 = vmul.f32 0.2, %v103_v8 }
  0xa3   :  { %v115_v11 = vsel %vm107_vm3, %v80_v7, %v111_v9  ;;  %v116_v12 = vsel %vm108_vm4, %v103_v8, %v112_v10 }
  0xa4   :  { %172 = vmatmul.f32.gmra.mxu2 %v115_v11  ;;  %195 = vmatmul.f32.gmra.mxu3 %v116_v12 }
 0x11f   :  { %v170_v14 = vpop.f32.mrf.mxu2  ;;  %v193_v15 = vpop.f32.mrf.mxu3 }
 0x120   :  { %v171_v16 = vadd.f32 %v210_v13, %v170_v14 }
 0x122   :  { %v194_v17 = vadd.f32 %v193_v15, %v171_v16 }
 0x124   :  { %200 = vst.msk [vmem:[%s436_s5] sm:$0xff] %vm199_vm5, %v194_v17 }
 0x127   :  { %v173_v18 = vpop.f32.mrf.mxu2  ;;  %v196_v20 = vpop.f32.mrf.mxu3 }
 0x128   :  { %v174_v19 = vadd.f32 %v210_v13, %v173_v18 }
 0x12a   :  { %v197_v21 = vadd.f32 %v196_v20, %v174_v19 }
 0x12c   :  { %201 = vst.msk [vmem:[%s436_s5 + $0x8] sm:$0xff] %vm199_vm5, %v197_v21 }

</bundles_post_ra>
